<compile_context>
chip_gen: v7x
topology: tpu7x:2x2x1
jax: 0.10.0
libtpu: 0.0.40
codegen_flags: <defaults>
</compile_context>

<pallas_src>
import functools
import math
import numpy as np
import jax
import jax.numpy as jnp
from jax.experimental import pallas as pl
from jax.experimental.pallas import tpu as pltpu

NUM_FEAT = 8            # [category_id(-1 baked in), score, x, y, w, h, valid, pad]
MAX_ROWS_PER_STEP = 32  # fatter steps amortize the ~0.35 us per-grid-step overhead


def _gather_kernel(rows_ref, table_hbm, out_ref, sem, *, rows_per_step):
    """Pure DMA row-gather from an HBM-resident table.

    rows_ref : SMEM int32 [B_pad]      (scalar-prefetched image-row indices)
    table_hbm: HBM  f32   [N_pad, L]   (memory_space=pl.ANY, never streamed)
    out_ref  : VMEM f32   [rows_per_step, L]  (lane-dense output tile, L % 128 == 0)
    sem      : DMA semaphores [rows_per_step]
    """
    base = pl.program_id(0) * rows_per_step
    copies = []
    for i in range(rows_per_step):               # static unroll
        r = rows_ref[base + i]                   # cheap SMEM scalar read
        cp = pltpu.make_async_copy(
            table_hbm.at[pl.ds(r, 1), :],        # one (1, L) row, dynamic HBM offset
            out_ref.at[pl.ds(i, 1), :],          # straight into the output tile
            sem.at[i])
        cp.start()                               # all rows in flight ...
        copies.append(cp)
    for cp in copies:                            # ... before the first wait
        cp.wait()


def gather_predictions(table, row_indices):
    """table: f32 [N_pad, L] (L multiple of 128, lives in HBM);
    row_indices: int32 [B] device array.
    Returns f32 [B, L] (category lane already decremented in the table)."""
    N, L = table.shape
    B = int(row_indices.shape[0])

    if B <= MAX_ROWS_PER_STEP:
        rows_per_step = max(B, 1)                # single grid step, block == full output
        B_pad = rows_per_step
    else:
        rows_per_step = MAX_ROWS_PER_STEP
        B_pad = rows_per_step * math.ceil(B / rows_per_step)

    rows = row_indices.astype(jnp.int32)
    if B_pad != B:
        rows = jnp.zeros((B_pad,), jnp.int32).at[:B].set(rows)

    out = pl.pallas_call(
        functools.partial(_gather_kernel, rows_per_step=rows_per_step),
        out_shape=jax.ShapeDtypeStruct((B_pad, L), table.dtype),
        grid_spec=pltpu.PrefetchScalarGridSpec(
            num_scalar_prefetch=1,
            grid=(B_pad // rows_per_step,),
            in_specs=[
                # Table stays in HBM; the kernel DMAs individual rows itself.
                pl.BlockSpec(memory_space=pl.ANY),
            ],
            out_specs=pl.BlockSpec((rows_per_step, L), lambda g, rows: (g, 0)),
            scratch_shapes=[pltpu.SemaphoreType.DMA((rows_per_step,))],
        ),
        compiler_params=pltpu.CompilerParams(
            # Batch tiles are independent; on v7x this shards steps across both TCs
            # (free, since the table is not a pipelined VMEM input anymore).
            dimension_semantics=("parallel",)),
    )(rows, table)
    return out[:B] if B_pad != B else out


class LVISPredictionsLoader:
    """JAX/Pallas port of the dummy predictions loader.

    Instead of reading a JSON file, the constructor takes an in-memory dict
    {image_id(str): list[dict]} (same schema as the original file) and packs
    it into a dense, lane-aligned HBM table for the kernel.  The static
    `category_id -= 1` of the original forward() is baked into the table.
    """

    def __init__(self, image_predictions):
        self.image_predictions = image_predictions
        # matches nn.Parameter(torch.zeros(1)); unused in forward
        self.dummy_parameter = jnp.zeros((1,), dtype=jnp.float32)
        self._rows_cache = {}

        items = sorted(image_predictions.items(), key=lambda kv: int(kv[0]))
        n_images = len(items)

        # MAX_INST derived from data, rounded up to a multiple of 16 so the
        # packed row width (MAX_INST * NUM_FEAT) is a multiple of 128 lanes.
        longest = max((len(v) for _, v in items), default=1)
        self.max_inst = max(16, 16 * math.ceil(longest / 16))
        lanes = self.max_inst * NUM_FEAT

        n_pad = max(8, 8 * math.ceil(n_images / 8))   # sublane-align table rows
        tbl = np.zeros((n_pad, self.max_inst, NUM_FEAT), dtype=np.float32)
        self._id2row = {}
        for r, (im_id, instances) in enumerate(items):
            self._id2row[str(im_id)] = r
            for i, inst in enumerate(instances):
                x, y, w, h = inst["bbox"]
                tbl[r, i] = [float(inst["category_id"]) - 1.0,  # decrement baked in
                             float(inst["score"]),
                             float(x), float(y), float(w), float(h),
                             1.0, 0.0]
        # Lane-dense [N_pad, L]; stays in HBM, gathered per-row by the kernel.
        self.table = jnp.asarray(tbl.reshape(n_pad, lanes))

    def _row_indices_for(self, batched_inputs):
        key = tuple(str(inp["image_id"]) for inp in batched_inputs)
        dev = self._rows_cache.get(key)
        if dev is None:
            dev = jnp.asarray([self._id2row[k] for k in key], dtype=jnp.int32)
            self._rows_cache[key] = dev          # avoid re-uploading per forward()
        return dev

    def gather_rows_device(self, batched_inputs):
        """Device-side hot path for JAX callers: returns f32 [B, max_inst*NUM_FEAT]."""
        return gather_predictions(self.table, self._row_indices_for(batched_inputs))

    def forward(self, batched_inputs):
        out_dev = self.gather_rows_device(batched_inputs)   # Pallas hot path

        # Single host round trip; device_get blocks until the result is ready.
        # TODO(synk): callers that stay in JAX should consume gather_rows_device()
        # directly instead of paying this host transfer + Python dict construction.
        out = np.asarray(jax.device_get(out_dev)).reshape(
            len(batched_inputs), self.max_inst, NUM_FEAT)

        predictions = []
        for b, inp in enumerate(batched_inputs):
            im_id = inp["image_id"]
            instances = []
            for i in range(self.max_inst):
                if out[b, i, 6] <= 0.0:          # valid instances are packed first
                    break
                instances.append({
                    "image_id": im_id,
                    "category_id": int(round(float(out[b, i, 0]))),  # already -1'd
                    "score": float(out[b, i, 1]),
                    "bbox": [float(out[b, i, 2]), float(out[b, i, 3]),
                             float(out[b, i, 4]), float(out[b, i, 5])],
                    # TODO(synk): "segmentation" (RLE strings) has no tensor/Pallas
                    # representation; omitted from the dense table.
                })
            predictions.append({"image_id": im_id, "instances": instances})
        return predictions

    __call__ = forward


def _make_synthetic_predictions(key, n_images=4):
    """Deterministically build the 'pre-generated predictions file' contents."""
    preds = {}
    for r in range(n_images):
        key, k1, k2, k3, k4 = jax.random.split(key, 5)
        n_inst = int(jax.random.randint(k1, (), 3, 9))
        cats = jax.random.randint(k2, (n_inst,), 1, 21)
        scores = jax.random.uniform(k3, (n_inst,))
        boxes = jax.random.uniform(k4, (n_inst, 4), minval=0.0, maxval=64.0)
        im_id = 1000 + r
        preds[str(im_id)] = [
            {"image_id": im_id,
             "category_id": int(cats[i]),
             "score": float(scores[i]),
             "bbox": [float(v) for v in boxes[i]]}
            for i in range(n_inst)
        ]
    return preds


if __name__ == "__main__":
    key = jax.random.PRNGKey(0)
    image_predictions = _make_synthetic_predictions(key, n_images=4)

    loader = LVISPredictionsLoader(image_predictions)

    batched_inputs = [{"image_id": 1002, "image": jnp.zeros((3, 16, 16))},
                      {"image_id": 1000, "image": jnp.zeros((3, 16, 16))}]

    # Run the Pallas kernel once and block on the device result.
    dev_out = jax.block_until_ready(loader.gather_rows_device(batched_inputs))
    assert dev_out.shape == (len(batched_inputs), loader.max_inst * NUM_FEAT)

    # Full forward (gather + host unpack) and verification against a pure-Python
    # reference of the original module's semantics.
    out = loader(batched_inputs)
    for b, inp in enumerate(batched_inputs):
        ref_insts = image_predictions[str(inp["image_id"])]
        got_insts = out[b]["instances"]
        assert out[b]["image_id"] == inp["image_id"]
        assert len(got_insts) == len(ref_insts)
        for ref, got in zip(ref_insts, got_insts):
            assert got["category_id"] == ref["category_id"] - 1
            assert abs(got["score"] - ref["score"]) < 1e-5
            assert all(abs(a - b_) < 1e-4 for a, b_ in zip(got["bbox"], ref["bbox"]))

    print("KERNEL_OK")
</pallas_src>

<mosaic_0001>
module attributes {stable_mosaic.version = 11 : i64} {
  func.func @_gather_kernel(%arg0: i32, %arg1: memref<2xi32, #tpu.memory_space<smem>>, %arg2: memref<8x128xf32, #tpu.memory_space<any>>, %arg3: memref<2x128xf32, #tpu.memory_space<vmem>>, %arg4: memref<2x!tpu.dma_semaphore, #tpu.memory_space<semaphore_mem>>) attributes {dimension_semantics = [#tpu.dimension_semantics<parallel>], iteration_bounds = array<i64: 1>, scalar_prefetch = 1 : i64, scratch_operands = 1 : i64, tpu.core_type = #tpu.core_type<tc>, window_params = [{}, {transform_indices = @transform_1, window_bounds = array<i64: 2, 128>}]} {
    %c2_i32 = arith.constant 2 : i32
    %0 = arith.muli %arg0, %c2_i32 : i32
    %c0_i32 = arith.constant 0 : i32
    %1 = arith.addi %0, %c0_i32 : i32
    %2 = arith.index_cast %1 : i32 to index
    %3 = memref.load %arg1[%2] : memref<2xi32, #tpu.memory_space<smem>>
    %c0_i32_0 = arith.constant 0 : i32
    %c0_i32_1 = arith.constant 0 : i32
    %4 = tpu.memref_slice %arg2[%3, %c0_i32_1] : memref<8x128xf32, #tpu.memory_space<any>> -> memref<1x128xf32, #tpu.memory_space<any>>
    %c0_i32_2 = arith.constant 0 : i32
    %c0_i32_3 = arith.constant 0 : i32
    %5 = tpu.memref_slice %arg3[%c0_i32_2, %c0_i32_3] : memref<2x128xf32, #tpu.memory_space<vmem>> -> memref<1x128xf32, #tpu.memory_space<vmem>>
    %6 = tpu.memref_slice %arg4[%c0_i32_0] : memref<2x!tpu.dma_semaphore, #tpu.memory_space<semaphore_mem>> -> memref<1x!tpu.dma_semaphore, #tpu.memory_space<semaphore_mem>>
    %7 = tpu.memref_squeeze %6 : memref<1x!tpu.dma_semaphore, #tpu.memory_space<semaphore_mem>> -> memref<!tpu.dma_semaphore, #tpu.memory_space<semaphore_mem>>
    tpu.enqueue_dma source(%4 : memref<1x128xf32, #tpu.memory_space<any>>) target(%5 : memref<1x128xf32, #tpu.memory_space<vmem>>) target_semaphore(%7 : memref<!tpu.dma_semaphore, #tpu.memory_space<semaphore_mem>>)
    %c1_i32 = arith.constant 1 : i32
    %8 = arith.addi %0, %c1_i32 : i32
    %9 = arith.index_cast %8 : i32 to index
    %10 = memref.load %arg1[%9] : memref<2xi32, #tpu.memory_space<smem>>
    %c1_i32_4 = arith.constant 1 : i32
    %c0_i32_5 = arith.constant 0 : i32
    %11 = tpu.memref_slice %arg2[%10, %c0_i32_5] : memref<8x128xf32, #tpu.memory_space<any>> -> memref<1x128xf32, #tpu.memory_space<any>>
    %c1_i32_6 = arith.constant 1 : i32
    %c0_i32_7 = arith.constant 0 : i32
    %12 = tpu.memref_slice %arg3[%c1_i32_6, %c0_i32_7] : memref<2x128xf32, #tpu.memory_space<vmem>> -> memref<1x128xf32, #tpu.memory_space<vmem>>
    %13 = tpu.memref_slice %arg4[%c1_i32_4] : memref<2x!tpu.dma_semaphore, #tpu.memory_space<semaphore_mem>> -> memref<1x!tpu.dma_semaphore, #tpu.memory_space<semaphore_mem>>
    %14 = tpu.memref_squeeze %13 : memref<1x!tpu.dma_semaphore, #tpu.memory_space<semaphore_mem>> -> memref<!tpu.dma_semaphore, #tpu.memory_space<semaphore_mem>>
    tpu.enqueue_dma source(%11 : memref<1x128xf32, #tpu.memory_space<any>>) target(%12 : memref<1x128xf32, #tpu.memory_space<vmem>>) target_semaphore(%14 : memref<!tpu.dma_semaphore, #tpu.memory_space<semaphore_mem>>)
    %c0_i32_8 = arith.constant 0 : i32
    %c0_i32_9 = arith.constant 0 : i32
    %15 = tpu.memref_slice %arg2[%3, %c0_i32_9] : memref<8x128xf32, #tpu.memory_space<any>> -> memref<1x128xf32, #tpu.memory_space<any>>
    %c0_i32_10 = arith.constant 0 : i32
    %c0_i32_11 = arith.constant 0 : i32
    %16 = tpu.memref_slice %arg3[%c0_i32_10, %c0_i32_11] : memref<2x128xf32, #tpu.memory_space<vmem>> -> memref<1x128xf32, #tpu.memory_space<vmem>>
    %17 = tpu.memref_slice %arg4[%c0_i32_8] : memref<2x!tpu.dma_semaphore, #tpu.memory_space<semaphore_mem>> -> memref<1x!tpu.dma_semaphore, #tpu.memory_space<semaphore_mem>>
    %18 = tpu.memref_squeeze %17 : memref<1x!tpu.dma_semaphore, #tpu.memory_space<semaphore_mem>> -> memref<!tpu.dma_semaphore, #tpu.memory_space<semaphore_mem>>
    tpu.wait_dma2 semaphore(%18 : memref<!tpu.dma_semaphore, #tpu.memory_space<semaphore_mem>>) src(%15 : memref<1x128xf32, #tpu.memory_space<any>>) dst(%16 : memref<1x128xf32, #tpu.memory_space<vmem>>)
    %c1_i32_12 = arith.constant 1 : i32
    %c0_i32_13 = arith.constant 0 : i32
    %19 = tpu.memref_slice %arg2[%10, %c0_i32_13] : memref<8x128xf32, #tpu.memory_space<any>> -> memref<1x128xf32, #tpu.memory_space<any>>
    %c1_i32_14 = arith.constant 1 : i32
    %c0_i32_15 = arith.constant 0 : i32
    %20 = tpu.memref_slice %arg3[%c1_i32_14, %c0_i32_15] : memref<2x128xf32, #tpu.memory_space<vmem>> -> memref<1x128xf32, #tpu.memory_space<vmem>>
    %21 = tpu.memref_slice %arg4[%c1_i32_12] : memref<2x!tpu.dma_semaphore, #tpu.memory_space<semaphore_mem>> -> memref<1x!tpu.dma_semaphore, #tpu.memory_space<semaphore_mem>>
    %22 = tpu.memref_squeeze %21 : memref<1x!tpu.dma_semaphore, #tpu.memory_space<semaphore_mem>> -> memref<!tpu.dma_semaphore, #tpu.memory_space<semaphore_mem>>
    tpu.wait_dma2 semaphore(%22 : memref<!tpu.dma_semaphore, #tpu.memory_space<semaphore_mem>>) src(%19 : memref<1x128xf32, #tpu.memory_space<any>>) dst(%20 : memref<1x128xf32, #tpu.memory_space<vmem>>)
    return
  }
  func.func @transform_1(%arg0: i32, %arg1: memref<2xi32, #tpu.memory_space<smem>>) -> (i32, i32) {
    %c0_i32 = arith.constant 0 : i32
    %c0_i32_0 = arith.constant 0 : i32
    return %arg0, %c0_i32 : i32, i32
  }
}

</mosaic_0001>

<bundles_post_ra>
// kernel: tpu_custom_call.1
= control target key start
LH: loop header
LB: loop body
LE: loop exit
PB: predicated region body
PF: predicated region fallthrough
CT: control target
= control target key end

     0   :  { %s266_s0 = inlined_call_operand.hbm [shape: s32[2], index: 0, kind: input, shape index: {}]   ;;  %s267_s1 = inlined_call_operand.hbm [shape: f32[8,128], index: 1, kind: input, shape index: {}]   ;;  %s268_s2 = inlined_call_operand.hbm [shape: f32[2,128], index: 2, kind: output, shape index: {}]  }
   0x1   :  { %s88_s11 = scalar_lea.hbm %s266_s0, 16 }
   0x2   :  { %p89_p0 = scmp.ne.s32.totalorder %s266_s0, %s88_s11  ;;  %p92_p1 = scmp.lt.u32.totalorder %s88_s11, %s266_s0 }
   0x4   :  { %p94_p2 = pnand %p92_p1, %p89_p0 }
   0x6   :  { %97 = shalt.err (!%p94_p2)  }
   0x7   :  { %s176_s16 = smov [#allocation4]  }
   0x8   :  { %8 = dma.hbm_to_smem %s266_s0, 16, %s176_s16, [#allocation3] }
   0x9   :  { %168 = dma.done.wait [#allocation3], 16 }
   0xa   :  { %169 = vsyncadd [#allocation3], 4294967280 }
   0xb   :  { %10 = sfence }
   0xc   :  { %11 = vsyncpa [#allocation6], 0  ;;  %s13_s19 = sld [smem:[#allocation4]]  ;;  %s206_s20 = sld [smem:[#allocation4 + $0x1]] }
   0xd   :  { %s177_s21 = smov [#allocation5]   ;;  %s178_s23 = smov [#allocation5 + $0x1]  }
   0xe   :  { %s23_s22 = sshll.u32 %s177_s21, 4  ;;  %s40_s24 = sshll.u32 %s178_s23, 4  ;;  %s208_s22 = int_to_ptr.vmem [resolvable:$true] %s23_s22  ;;  %s210_s24 = int_to_ptr.vmem [resolvable:$true] %s40_s24 }
   0xf   :  { %s100_s4 = scalar_lea.hbm %s267_s1, 128 }
  0x12   :  { %s80_s25 = sshll.u32 %s13_s19, 4  ;;  %s82_s28 = sshll.u32 %s206_s20, 4 }
  0x13   :  { %s15_s0 = scalar_lea.hbm %s267_s1, %s80_s25 }
  0x14   :  { %s98_s29 = scalar_lea.hbm %s15_s0, 16  ;;  %p101_p4 = scmp.lt.u32.totalorder %s15_s0, %s267_s1 }
  0x15   :  { %p99_p3 = scmp.ne.s32.totalorder %s15_s0, %s98_s29  ;;  %p102_p5 = scmp.lt.u32.totalorder %s100_s4, %s98_s29 }
  0x16   :  { %p104_p7 = scmp.lt.u32.totalorder %s98_s29, %s15_s0 }
  0x17   :  { %p103_p6 = por %p102_p5, %p101_p4 }
  0x19   :  { %p105_p8 = por %p104_p7, %p103_p6 }
  0x1b   :  { %p106_p9 = pnand %p105_p8, %p99_p3 }
  0x1d   :  { %109 = shalt.err (!%p106_p9)  }
  0x1e   :  { %s110_s7 = scalar_lea.vmem %s208_s22, 16  ;;  %s225_s8 = scalar_lea.vmem %s208_s22, 32 }
  0x1f   :  { %p111_p10 = scmp.ne.s32.totalorder %s208_s22, %s110_s7  ;;  %p115_p11 = scmp.lt.s32.totalorder %s208_s22, %s208_s22 }
  0x20   :  { %p116_p12 = scmp.lt.s32.totalorder %s225_s8, %s110_s7 }
  0x22   :  { %p117_p13 = por %p116_p12, %p115_p11 }
  0x24   :  { %p118_p0 = pnand %p117_p13, %p111_p10 }
  0x26   :  { %121 = shalt.err (!%p118_p0)  }
  0x27   :  { %26 = dma.hbm_to_vmem [thread:$0]  %s15_s0, 16, %s208_s22, [#allocation2] }
  0x28   :  { %s30_s11 = scalar_lea.hbm %s267_s1, %s82_s28 }
  0x29   :  { %s122_s12 = scalar_lea.hbm %s30_s11, 16  ;;  %p125_p2 = scmp.lt.u32.totalorder %s30_s11, %s267_s1 }
  0x2a   :  { %p123_p1 = scmp.ne.s32.totalorder %s30_s11, %s122_s12  ;;  %p126_p3 = scmp.lt.u32.totalorder %s100_s4, %s122_s12 }
  0x2b   :  { %p128_p5 = scmp.lt.u32.totalorder %s122_s12, %s30_s11 }
  0x2c   :  { %p127_p4 = por %p126_p3, %p125_p2 }
  0x2e   :  { %p129_p6 = por %p128_p5, %p127_p4 }
  0x30   :  { %p130_p7 = pnand %p129_p6, %p123_p1 }
  0x32   :  { %133 = shalt.err (!%p130_p7)  }
  0x33   :  { %s134_s15 = scalar_lea.vmem %s210_s24, 16  ;;  %p139_p9 = scmp.lt.s32.totalorder %s210_s24, %s208_s22 }
  0x34   :  { %p135_p8 = scmp.ne.s32.totalorder %s210_s24, %s134_s15  ;;  %p140_p10 = scmp.lt.s32.totalorder %s225_s8, %s134_s15 }
  0x36   :  { %p141_p12 = por %p140_p10, %p139_p9 }
  0x38   :  { %p142_p13 = pnand %p141_p12, %p135_p8 }
  0x3a   :  { %145 = shalt.err (!%p142_p13)  }
  0x3b   :  { %43 = dma.hbm_to_vmem [thread:$0]  %s30_s11, 16, %s210_s24, [#allocation2 + $0x1] }
  0x3c   :  { %170 = dma.done.wait [#allocation2], 16 }
  0x3d   :  { %171 = vsyncadd [#allocation2], 4294967280 }
  0x3e   :  { %172 = dma.done.wait [#allocation2 + $0x1], 16 }
  0x3f   :  { %173 = vsyncadd [#allocation2 + $0x1], 4294967280  ;;  %p147_p0 = scmp.ne.s32.totalorder %s208_s22, %s225_s8  ;;  %p152_p1 = scmp.lt.s32.totalorder %s225_s8, %s225_s8 }
  0x41   :  { %p153_p2 = por %p152_p1, %p115_p11 }
  0x43   :  { %p154_p3 = pnand %p153_p2, %p147_p0 }
  0x45   :  { %157 = shalt.err (!%p154_p3)
}
  0x46   :  { %s158_s17 = scalar_lea.hbm %s268_s2, 32 }
  0x47   :  { %p159_p4 = scmp.ne.s32.totalorder %s268_s2, %s158_s17  ;;  %p162_p5 = scmp.lt.u32.totalorder %s158_s17, %s268_s2 }
  0x49   :  { %p164_p6 = pnand %p162_p5, %p159_p4 }
  0x4b   :  { %167 = shalt.err (!%p164_p6)
}
  0x4c   :  { %58 = dma.vmem_to_hbm [thread:$0]  %s208_s22, 32, %s268_s2, [#allocation6]  }
  0x4d   :  { %174 = dma.done.wait [#allocation6], 32  }
  0x4e   :  { %175 = vsyncadd [#allocation6], 4294967264 }
  0x4f   :  { %62 = vsyncpa [#allocation6], 1 }
  0x50   :  { %63 = vsyncmov [#allocation2] }
  0x53   :  { %s64_s25 = vpop.sfrf %63 }
  0x54   :  { %p83_p11 = scmp.ne.s32.totalorder %s64_s25, 0 }
  0x56   :  { %68 = shalt.err (%p83_p11)  }
  0x57   :  { %70 = vsyncmov [#allocation2 + $0x1] }
  0x5a   :  { %s71_s26 = vpop.sfrf %70 }
  0x5b   :  { %p84_p7 = scmp.ne.s32.totalorder %s71_s26, 0 }
  0x5d   :  { %75 = shalt.err (%p84_p7)  }

</bundles_post_ra>
